<compile_context>
chip_gen: v7x
topology: tpu7x:2x2x1
jax: 0.10.0
libtpu: 0.0.40
codegen_flags: <defaults>
</compile_context>

<pallas_src>
import functools

import jax
import jax.numpy as jnp
from jax import lax
from jax.experimental import pallas as pl
from jax.experimental.pallas import tpu as pltpu


def _intro_block_kernel(x_ref, w_ref, gb_ref, mask_ref, *rest,
                        nb, ksize, width, pad, hw, hwp, eps, pool):
    """One grid step == NB samples, everything resident in VMEM.

    x_ref:    (NB, Cin, L) bf16    flat H-padded samples, L = (H+2p)*W + 2p
    w_ref:    (Cout, K*K*Cin) bf16 conv weight, rows ordered [kh, kw, ci]
    gb_ref:   (Cout, 2) f32        gamma | beta
    mask_ref: (K, H*W) bf16        per-kernel-column validity mask (handles W padding)
    pool_ref: (H*W, Hp*Wp) bf16    avg-pool operator (only when pool=True)
    o_ref:    (1, Cout, NB*Hp*Wp)  lane-dense output block
    """
    if pool:
        pool_ref, o_ref = rest
    else:
        (o_ref,) = rest
        pool_ref = None

    w = w_ref[...]                               # (Cout, K*K*Cin) bf16
    gamma = gb_ref[:, 0:1]                       # (Cout, 1) f32
    beta = gb_ref[:, 1:2]                        # (Cout, 1) f32
    cmask = mask_ref[...]                        # (K, HW) bf16 in {0, 1}
    pool_m = pool_ref[...] if pool else None     # (HW, HWp) bf16

    for s in range(nb):                          # static unrolled loop over the batch block
        x_s = x_ref[s]                           # (Cin, L) bf16

        # ---- in-VMEM im2col: K*K shifted lane slices of the flat padded sample ----
        taps = []
        for kh in range(ksize):
            for kw in range(ksize):
                off = kh * width + kw            # constant flat offset of tap (kh, kw)
                t = x_s[:, off:off + hw]         # (Cin, HW) bf16
                if kw != pad:                    # zero columns whose W-neighbour is padding
                    t = t * cmask[kw:kw + 1, :]
                taps.append(t)
        patches = jnp.concatenate(taps, axis=0)  # (K*K*Cin, HW) bf16

        # ---- Conv2d as one MXU matmul (bf16 in, f32 accumulate) ----
        conv = jnp.dot(w, patches, preferred_element_type=jnp.float32)   # (Cout, HW)

        # ---- Instance norm (GroupNorm(planes, planes)) + fused affine + ReLU ----
        mean = jnp.mean(conv, axis=1, keepdims=True)                     # (Cout, 1)
        centered = conv - mean
        var = jnp.mean(centered * centered, axis=1, keepdims=True)       # (Cout, 1)
        scale = gamma * lax.rsqrt(var + eps)                             # EUP rsqrt
        y = jnp.maximum(centered * scale + beta, 0.0)                    # (Cout, HW) f32

        # ---- AvgPool2d as a second (bf16) MXU matmul; skipped for size='small' ----
        if pool:
            out_s = jnp.dot(y.astype(jnp.bfloat16), pool_m,
                            preferred_element_type=jnp.float32)          # (Cout, HWp)
        else:
            out_s = y

        o_ref[0, :, s * hwp:(s + 1) * hwp] = out_s.astype(o_ref.dtype)


def intro_block_forward(x, weight, gamma, beta, *, size="mid", eps=1e-5):
    """IntroBlock forward (norm_type='instance') as a single fused Pallas TPU kernel.

    x:      (N, Cin, H, W)        NCHW input
    weight: (Cout, Cin, K, K)     conv weight (stride 1, padding K//2, no bias)
    gamma:  (Cout,)               instance-norm scale
    beta:   (Cout,)               instance-norm shift
    """
    N, C_in, H, W = x.shape
    C_out, _, K, _ = weight.shape
    assert K % 2 == 1, "kernel size must be odd (padding = K // 2)"
    pad = K // 2

    if size == "large":
        pool_k = 4
    elif size == "mid":
        pool_k = 2
    elif size == "small":
        pool_k = 1
    else:
        raise AssertionError("Check network size type!")
    assert H % pool_k == 0 and W % pool_k == 0
    Hp, Wp = H // pool_k, W // pool_k
    HW, HWp = H * W, Hp * Wp
    CKK = C_in * K * K
    L = (H + 2 * pad) * W + 2 * pad          # flat length of an H-padded, end-padded sample

    # Samples per grid step: make the output block lane-dense (NB*HWp >= 128 when possible).
    # Shapes here are tiny, so VMEM per block (~NB*Cin*L bf16) is never a concern.
    target = max(1, (128 + HWp - 1) // HWp)
    NB = N
    for d in range(target, N + 1):
        if N % d == 0:
            NB = d
            break
    G = N // NB

    # ---------------- wrapper-side layout plumbing (cheap, ~size of x) ----------------
    x_bf = x.astype(jnp.bfloat16)
    x_h = jnp.pad(x_bf, ((0, 0), (0, 0), (pad, pad), (0, 0)))            # pad H only
    x_flat = jnp.pad(x_h.reshape(N, C_in, (H + 2 * pad) * W),
                     ((0, 0), (0, 0), (pad, pad)))                       # (N, Cin, L)

    # conv weight flattened to match in-kernel patch row order [kh, kw, ci]
    w_flat = weight.transpose(0, 2, 3, 1).reshape(C_out, CKK).astype(jnp.bfloat16)

    # merged gamma/beta operand
    gb = jnp.stack([gamma, beta], axis=1).astype(jnp.float32)            # (Cout, 2)

    # per-kernel-column validity mask: column c of the output is valid for tap kw iff
    # 0 <= c + kw - pad < W (otherwise the flat-shift trick fetches a wrapped neighbour).
    cols = jnp.arange(HW, dtype=jnp.int32) % W                           # (HW,)
    shifted = cols[None, :] + jnp.arange(K, dtype=jnp.int32)[:, None] - pad
    colmask = ((shifted >= 0) & (shifted < W)).astype(jnp.bfloat16)      # (K, HW)

    operands = [x_flat, w_flat, gb, colmask]
    in_specs = [
        pl.BlockSpec((NB, C_in, L), lambda g: (g, 0, 0)),    # NB flat samples per step
        pl.BlockSpec((C_out, CKK), lambda g: (0, 0)),        # conv weight (resident)
        pl.BlockSpec((C_out, 2), lambda g: (0, 0)),          # gamma|beta (resident)
        pl.BlockSpec((K, HW), lambda g: (0, 0)),             # column masks (resident)
    ]

    if pool_k > 1:
        out_idx = (jnp.arange(H)[:, None] // pool_k) * Wp + (jnp.arange(W)[None, :] // pool_k)
        pool_mat = (out_idx.reshape(HW, 1) == jnp.arange(HWp)[None, :]).astype(jnp.float32)
        pool_mat = (pool_mat / float(pool_k * pool_k)).astype(jnp.bfloat16)   # exact in bf16
        operands.append(pool_mat)
        in_specs.append(pl.BlockSpec((HW, HWp), lambda g: (0, 0)))

    kernel = functools.partial(
        _intro_block_kernel, nb=NB, ksize=K, width=W, pad=pad,
        hw=HW, hwp=HWp, eps=eps, pool=(pool_k > 1))

    flops = int(2 * N * C_out * CKK * HW                         # conv matmul
                + (2 * N * C_out * HW * HWp if pool_k > 1 else 0)  # pooling matmul
                + 8 * N * C_out * HW)                            # norm / relu elementwise
    bytes_accessed = int(2 * (x_flat.size + w_flat.size + colmask.size
                              + (HW * HWp if pool_k > 1 else 0))
                         + 4 * (gb.size + N * C_out * HWp))

    out = pl.pallas_call(
        kernel,
        out_shape=jax.ShapeDtypeStruct((G, C_out, NB * HWp), x.dtype),
        grid=(G,),
        in_specs=in_specs,
        out_specs=pl.BlockSpec((1, C_out, NB * HWp), lambda g: (g, 0, 0)),
        compiler_params=pltpu.CompilerParams(
            dimension_semantics=("parallel",),
        ),
        cost_estimate=pl.CostEstimate(
            flops=flops, transcendentals=int(N * C_out), bytes_accessed=bytes_accessed),
    )(*operands)

    # (G, Cout, NB*HWp) -> (N, Cout, Hp, Wp)
    out = out.reshape(G, C_out, NB, Hp, Wp)
    out = out.transpose(0, 2, 1, 3, 4).reshape(N, C_out, Hp, Wp)
    return out


def _reference(x, weight, gamma, beta, *, size="mid", eps=1e-5):
    """Pure-JAX reference of IntroBlock (norm_type='instance')."""
    N, C_in, H, W = x.shape
    C_out, _, K, _ = weight.shape
    pad = K // 2
    conv = lax.conv_general_dilated(
        x, weight, window_strides=(1, 1), padding=[(pad, pad), (pad, pad)],
        dimension_numbers=("NCHW", "OIHW", "NCHW"))
    mean = conv.mean(axis=(2, 3), keepdims=True)
    var = ((conv - mean) ** 2).mean(axis=(2, 3), keepdims=True)
    y = (conv - mean) * lax.rsqrt(var + eps)
    y = y * gamma.reshape(1, C_out, 1, 1) + beta.reshape(1, C_out, 1, 1)
    y = jnp.maximum(y, 0.0)
    pool_k = {"large": 4, "mid": 2, "small": 1}[size]
    if pool_k > 1:
        y = y.reshape(N, C_out, H // pool_k, pool_k, W // pool_k, pool_k).mean(axis=(3, 5))
    return y


if __name__ == "__main__":
    key = jax.random.PRNGKey(0)
    k1, k2, k3, k4 = jax.random.split(key, 4)

    # Small shapes consistent with the module: nch=3 input channels, planes=4, 16x16 spatial.
    N, C_in, H, W = 2, 3, 16, 16
    planes, K = 4, 3
    size = "mid"   # conv3x3 -> instance norm -> relu -> avgpool(2, 2)

    def bf16_exact(a):
        # Keep test values exactly representable in bf16 so the bf16 MXU operands are
        # lossless in both the kernel and the reference -> tight, non-flaky comparison.
        return a.astype(jnp.bfloat16).astype(jnp.float32)

    x = bf16_exact(jax.random.normal(k1, (N, C_in, H, W), dtype=jnp.float32))
    weight = bf16_exact(0.2 * jax.random.normal(k2, (planes, C_in, K, K), dtype=jnp.float32))
    gamma = bf16_exact(1.0 + 0.1 * jax.random.normal(k3, (planes,), dtype=jnp.float32))
    beta = bf16_exact(0.1 * jax.random.normal(k4, (planes,), dtype=jnp.float32))

    y = intro_block_forward(x, weight, gamma, beta, size=size)
    jax.block_until_ready(y)

    y_ref = _reference(x, weight, gamma, beta, size=size)
    assert y.shape == (N, planes, H // 2, W // 2) and y.dtype == x.dtype
    max_err = float(jnp.max(jnp.abs(y - y_ref)))
    assert jnp.allclose(y, y_ref, atol=1e-2, rtol=1e-2), f"max abs err {max_err}"
    print("KERNEL_OK")
</pallas_src>

<mosaic_0001>
module attributes {stable_mosaic.version = 11 : i64} {
  func.func @_intro_block_kernel(%arg0: i32, %arg1: memref<2x3x290xbf16, #tpu.memory_space<vmem>>, %arg2: memref<4x27xbf16, #tpu.memory_space<vmem>>, %arg3: memref<4x2xf32, #tpu.memory_space<vmem>>, %arg4: memref<3x256xbf16, #tpu.memory_space<vmem>>, %arg5: memref<256x64xbf16, #tpu.memory_space<vmem>>, %arg6: memref<1x4x128xf32, #tpu.memory_space<vmem>>) attributes {dimension_semantics = [#tpu.dimension_semantics<parallel>], iteration_bounds = array<i64: 1>, scalar_prefetch = 0 : i64, scratch_operands = 0 : i64, tpu.core_type = #tpu.core_type<tc>, window_params = [{transform_indices = @transform_0, window_bounds = array<i64: 2, 3, 290>}, {pipeline_mode = #tpu.pipeline_mode<synchronous>, transform_indices = @transform_1, window_bounds = array<i64: 4, 27>}, {pipeline_mode = #tpu.pipeline_mode<synchronous>, transform_indices = @transform_2, window_bounds = array<i64: 4, 2>}, {pipeline_mode = #tpu.pipeline_mode<synchronous>, transform_indices = @transform_3, window_bounds = array<i64: 3, 256>}, {pipeline_mode = #tpu.pipeline_mode<synchronous>, transform_indices = @transform_4, window_bounds = array<i64: 256, 64>}, {transform_indices = @transform_5, window_bounds = array<i64: 1, 4, 128>}]} {
    %c0 = arith.constant 0 : index
    %c0_0 = arith.constant 0 : index
    %0 = vector.load %arg2[%c0, %c0_0] : memref<4x27xbf16, #tpu.memory_space<vmem>>, vector<4x27xbf16>
    %c0_1 = arith.constant 0 : index
    %c0_2 = arith.constant 0 : index
    %1 = vector.load %arg3[%c0_1, %c0_2] : memref<4x2xf32, #tpu.memory_space<vmem>>, vector<4x1xf32>
    %c0_3 = arith.constant 0 : index
    %c1 = arith.constant 1 : index
    %2 = vector.load %arg3[%c0_3, %c1] : memref<4x2xf32, #tpu.memory_space<vmem>>, vector<4x1xf32>
    %c0_4 = arith.constant 0 : index
    %c0_5 = arith.constant 0 : index
    %3 = vector.load %arg4[%c0_4, %c0_5] : memref<3x256xbf16, #tpu.memory_space<vmem>>, vector<3x256xbf16>
    %c0_6 = arith.constant 0 : index
    %c0_7 = arith.constant 0 : index
    %4 = vector.load %arg5[%c0_6, %c0_7] : memref<256x64xbf16, #tpu.memory_space<vmem>>, vector<256x64xbf16>
    %c0_8 = arith.constant 0 : index
    %c0_9 = arith.constant 0 : index
    %c0_10 = arith.constant 0 : index
    %5 = vector.load %arg1[%c0_8, %c0_9, %c0_10] : memref<2x3x290xbf16, #tpu.memory_space<vmem>>, vector<1x3x290xbf16>
    %6 = vector.shape_cast %5 : vector<1x3x290xbf16> to vector<3x290xbf16>
    %7 = vector.extract_strided_slice %6 {offsets = [0, 0], sizes = [3, 256], strides = [1, 1]} : vector<3x290xbf16> to vector<3x256xbf16>
    %8 = vector.extract_strided_slice %3 {offsets = [0, 0], sizes = [1, 256], strides = [1, 1]} : vector<3x256xbf16> to vector<1x256xbf16>
    %9 = vector.broadcast %8 : vector<1x256xbf16> to vector<3x256xbf16>
    %10 = arith.mulf %7, %9 : vector<3x256xbf16>
    %11 = vector.extract_strided_slice %6 {offsets = [0, 1], sizes = [3, 256], strides = [1, 1]} : vector<3x290xbf16> to vector<3x256xbf16>
    %12 = vector.extract_strided_slice %6 {offsets = [0, 2], sizes = [3, 256], strides = [1, 1]} : vector<3x290xbf16> to vector<3x256xbf16>
    %13 = vector.extract_strided_slice %3 {offsets = [2, 0], sizes = [1, 256], strides = [1, 1]} : vector<3x256xbf16> to vector<1x256xbf16>
    %14 = vector.broadcast %13 : vector<1x256xbf16> to vector<3x256xbf16>
    %15 = arith.mulf %12, %14 : vector<3x256xbf16>
    %16 = vector.extract_strided_slice %6 {offsets = [0, 16], sizes = [3, 256], strides = [1, 1]} : vector<3x290xbf16> to vector<3x256xbf16>
    %17 = vector.extract_strided_slice %3 {offsets = [0, 0], sizes = [1, 256], strides = [1, 1]} : vector<3x256xbf16> to vector<1x256xbf16>
    %18 = vector.broadcast %17 : vector<1x256xbf16> to vector<3x256xbf16>
    %19 = arith.mulf %16, %18 : vector<3x256xbf16>
    %20 = vector.extract_strided_slice %6 {offsets = [0, 17], sizes = [3, 256], strides = [1, 1]} : vector<3x290xbf16> to vector<3x256xbf16>
    %21 = vector.extract_strided_slice %6 {offsets = [0, 18], sizes = [3, 256], strides = [1, 1]} : vector<3x290xbf16> to vector<3x256xbf16>
    %22 = vector.extract_strided_slice %3 {offsets = [2, 0], sizes = [1, 256], strides = [1, 1]} : vector<3x256xbf16> to vector<1x256xbf16>
    %23 = vector.broadcast %22 : vector<1x256xbf16> to vector<3x256xbf16>
    %24 = arith.mulf %21, %23 : vector<3x256xbf16>
    %25 = vector.extract_strided_slice %6 {offsets = [0, 32], sizes = [3, 256], strides = [1, 1]} : vector<3x290xbf16> to vector<3x256xbf16>
    %26 = vector.extract_strided_slice %3 {offsets = [0, 0], sizes = [1, 256], strides = [1, 1]} : vector<3x256xbf16> to vector<1x256xbf16>
    %27 = vector.broadcast %26 : vector<1x256xbf16> to vector<3x256xbf16>
    %28 = arith.mulf %25, %27 : vector<3x256xbf16>
    %29 = vector.extract_strided_slice %6 {offsets = [0, 33], sizes = [3, 256], strides = [1, 1]} : vector<3x290xbf16> to vector<3x256xbf16>
    %30 = vector.extract_strided_slice %6 {offsets = [0, 34], sizes = [3, 256], strides = [1, 1]} : vector<3x290xbf16> to vector<3x256xbf16>
    %31 = vector.extract_strided_slice %3 {offsets = [2, 0], sizes = [1, 256], strides = [1, 1]} : vector<3x256xbf16> to vector<1x256xbf16>
    %32 = vector.broadcast %31 : vector<1x256xbf16> to vector<3x256xbf16>
    %33 = arith.mulf %30, %32 : vector<3x256xbf16>
    %34 = tpu.concatenate %10, %11, %15, %19, %20, %24, %28, %29, %33 in 0 : vector<3x256xbf16>, vector<3x256xbf16>, vector<3x256xbf16>, vector<3x256xbf16>, vector<3x256xbf16>, vector<3x256xbf16>, vector<3x256xbf16>, vector<3x256xbf16>, vector<3x256xbf16> -> vector<27x256xbf16>
    %cst = arith.constant dense<0.000000e+00> : vector<4x256xf32>
    %35 = tpu.matmul %0, %34, %cst {dimension_numbers = #tpu.dot_dimension_numbers<[1], [0], [0], [1], [0, 0, 1, 1], [], []>} : vector<4x27xbf16>, vector<27x256xbf16>, vector<4x256xf32> -> vector<4x256xf32>
    %cst_11 = arith.constant dense<0.000000e+00> : vector<4xf32>
    %36 = vector.multi_reduction <add>, %35, %cst_11 [1] : vector<4x256xf32> to vector<4xf32>
    %37 = vector.shape_cast %36 : vector<4xf32> to vector<4x1xf32>
    %cst_12 = arith.constant 2.560000e+02 : f32
    %38 = vector.broadcast %cst_12 : f32 to vector<4x1xf32>
    %39 = arith.divf %37, %38 : vector<4x1xf32>
    %40 = vector.broadcast %39 : vector<4x1xf32> to vector<4x256xf32>
    %41 = arith.subf %35, %40 : vector<4x256xf32>
    %42 = arith.mulf %41, %41 : vector<4x256xf32>
    %cst_13 = arith.constant dense<0.000000e+00> : vector<4xf32>
    %43 = vector.multi_reduction <add>, %42, %cst_13 [1] : vector<4x256xf32> to vector<4xf32>
    %44 = vector.shape_cast %43 : vector<4xf32> to vector<4x1xf32>
    %cst_14 = arith.constant 2.560000e+02 : f32
    %45 = vector.broadcast %cst_14 : f32 to vector<4x1xf32>
    %46 = arith.divf %44, %45 : vector<4x1xf32>
    %cst_15 = arith.constant 9.99999974E-6 : f32
    %47 = vector.broadcast %cst_15 : f32 to vector<4x1xf32>
    %48 = arith.addf %46, %47 : vector<4x1xf32>
    %49 = math.rsqrt %48 : vector<4x1xf32>
    %50 = arith.mulf %1, %49 : vector<4x1xf32>
    %51 = vector.broadcast %50 : vector<4x1xf32> to vector<4x256xf32>
    %52 = arith.mulf %41, %51 : vector<4x256xf32>
    %53 = vector.broadcast %2 : vector<4x1xf32> to vector<4x256xf32>
    %54 = arith.addf %52, %53 : vector<4x256xf32>
    %cst_16 = arith.constant 0.000000e+00 : f32
    %55 = vector.broadcast %cst_16 : f32 to vector<4x256xf32>
    %56 = arith.maximumf %54, %55 : vector<4x256xf32>
    %57 = arith.truncf %56 : vector<4x256xf32> to vector<4x256xbf16>
    %cst_17 = arith.constant dense<0.000000e+00> : vector<4x64xf32>
    %58 = tpu.matmul %57, %4, %cst_17 {dimension_numbers = #tpu.dot_dimension_numbers<[1], [0], [0], [1], [0, 0, 1, 1], [], []>} : vector<4x256xbf16>, vector<256x64xbf16>, vector<4x64xf32> -> vector<4x64xf32>
    %c0_18 = arith.constant 0 : index
    %c0_19 = arith.constant 0 : index
    %c0_20 = arith.constant 0 : index
    %59 = vector.load %arg6[%c0_18, %c0_19, %c0_20] : memref<1x4x128xf32, #tpu.memory_space<vmem>>, vector<1x4x64xf32>
    %60 = vector.shape_cast %59 : vector<1x4x64xf32> to vector<4x64xf32>
    %61 = vector.shape_cast %58 : vector<4x64xf32> to vector<1x4x64xf32>
    tpu.vector_store %arg6[%c0_18, %c0_19, %c0_20], %61 {strides = array<i32>} : memref<1x4x128xf32, #tpu.memory_space<vmem>>, vector<1x4x64xf32>,
    %c1_21 = arith.constant 1 : index
    %c0_22 = arith.constant 0 : index
    %c0_23 = arith.constant 0 : index
    %62 = vector.load %arg1[%c1_21, %c0_22, %c0_23] : memref<2x3x290xbf16, #tpu.memory_space<vmem>>, vector<1x3x290xbf16>
    %63 = vector.shape_cast %62 : vector<1x3x290xbf16> to vector<3x290xbf16>
    %64 = vector.extract_strided_slice %63 {offsets = [0, 0], sizes = [3, 256], strides = [1, 1]} : vector<3x290xbf16> to vector<3x256xbf16>
    %65 = vector.extract_strided_slice %3 {offsets = [0, 0], sizes = [1, 256], strides = [1, 1]} : vector<3x256xbf16> to vector<1x256xbf16>
    %66 = vector.broadcast %65 : vector<1x256xbf16> to vector<3x256xbf16>
    %67 = arith.mulf %64, %66 : vector<3x256xbf16>
    %68 = vector.extract_strided_slice %63 {offsets = [0, 1], sizes = [3, 256], strides = [1, 1]} : vector<3x290xbf16> to vector<3x256xbf16>
    %69 = vector.extract_strided_slice %63 {offsets = [0, 2], sizes = [3, 256], strides = [1, 1]} : vector<3x290xbf16> to vector<3x256xbf16>
    %70 = vector.extract_strided_slice %3 {offsets = [2, 0], sizes = [1, 256], strides = [1, 1]} : vector<3x256xbf16> to vector<1x256xbf16>
    %71 = vector.broadcast %70 : vector<1x256xbf16> to vector<3x256xbf16>
    %72 = arith.mulf %69, %71 : vector<3x256xbf16>
    %73 = vector.extract_strided_slice %63 {offsets = [0, 16], sizes = [3, 256], strides = [1, 1]} : vector<3x290xbf16> to vector<3x256xbf16>
    %74 = vector.extract_strided_slice %3 {offsets = [0, 0], sizes = [1, 256], strides = [1, 1]} : vector<3x256xbf16> to vector<1x256xbf16>
    %75 = vector.broadcast %74 : vector<1x256xbf16> to vector<3x256xbf16>
    %76 = arith.mulf %73, %75 : vector<3x256xbf16>
    %77 = vector.extract_strided_slice %63 {offsets = [0, 17], sizes = [3, 256], strides = [1, 1]} : vector<3x290xbf16> to vector<3x256xbf16>
    %78 = vector.extract_strided_slice %63 {offsets = [0, 18], sizes = [3, 256], strides = [1, 1]} : vector<3x290xbf16> to vector<3x256xbf16>
    %79 = vector.extract_strided_slice %3 {offsets = [2, 0], sizes = [1, 256], strides = [1, 1]} : vector<3x256xbf16> to vector<1x256xbf16>
    %80 = vector.broadcast %79 : vector<1x256xbf16> to vector<3x256xbf16>
    %81 = arith.mulf %78, %80 : vector<3x256xbf16>
    %82 = vector.extract_strided_slice %63 {offsets = [0, 32], sizes = [3, 256], strides = [1, 1]} : vector<3x290xbf16> to vector<3x256xbf16>
    %83 = vector.extract_strided_slice %3 {offsets = [0, 0], sizes = [1, 256], strides = [1, 1]} : vector<3x256xbf16> to vector<1x256xbf16>
    %84 = vector.broadcast %83 : vector<1x256xbf16> to vector<3x256xbf16>
    %85 = arith.mulf %82, %84 : vector<3x256xbf16>
    %86 = vector.extract_strided_slice %63 {offsets = [0, 33], sizes = [3, 256], strides = [1, 1]} : vector<3x290xbf16> to vector<3x256xbf16>
    %87 = vector.extract_strided_slice %63 {offsets = [0, 34], sizes = [3, 256], strides = [1, 1]} : vector<3x290xbf16> to vector<3x256xbf16>
    %88 = vector.extract_strided_slice %3 {offsets = [2, 0], sizes = [1, 256], strides = [1, 1]} : vector<3x256xbf16> to vector<1x256xbf16>
    %89 = vector.broadcast %88 : vector<1x256xbf16> to vector<3x256xbf16>
    %90 = arith.mulf %87, %89 : vector<3x256xbf16>
    %91 = tpu.concatenate %67, %68, %72, %76, %77, %81, %85, %86, %90 in 0 : vector<3x256xbf16>, vector<3x256xbf16>, vector<3x256xbf16>, vector<3x256xbf16>, vector<3x256xbf16>, vector<3x256xbf16>, vector<3x256xbf16>, vector<3x256xbf16>, vector<3x256xbf16> -> vector<27x256xbf16>
    %cst_24 = arith.constant dense<0.000000e+00> : vector<4x256xf32>
    %92 = tpu.matmul %0, %91, %cst_24 {dimension_numbers = #tpu.dot_dimension_numbers<[1], [0], [0], [1], [0, 0, 1, 1], [], []>} : vector<4x27xbf16>, vector<27x256xbf16>, vector<4x256xf32> -> vector<4x256xf32>
    %cst_25 = arith.constant dense<0.000000e+00> : vector<4xf32>
    %93 = vector.multi_reduction <add>, %92, %cst_25 [1] : vector<4x256xf32> to vector<4xf32>
    %94 = vector.shape_cast %93 : vector<4xf32> to vector<4x1xf32>
    %cst_26 = arith.constant 2.560000e+02 : f32
    %95 = vector.broadcast %cst_26 : f32 to vector<4x1xf32>
    %96 = arith.divf %94, %95 : vector<4x1xf32>
    %97 = vector.broadcast %96 : vector<4x1xf32> to vector<4x256xf32>
    %98 = arith.subf %92, %97 : vector<4x256xf32>
    %99 = arith.mulf %98, %98 : vector<4x256xf32>
    %cst_27 = arith.constant dense<0.000000e+00> : vector<4xf32>
    %100 = vector.multi_reduction <add>, %99, %cst_27 [1] : vector<4x256xf32> to vector<4xf32>
    %101 = vector.shape_cast %100 : vector<4xf32> to vector<4x1xf32>
    %cst_28 = arith.constant 2.560000e+02 : f32
    %102 = vector.broadcast %cst_28 : f32 to vector<4x1xf32>
    %103 = arith.divf %101, %102 : vector<4x1xf32>
    %cst_29 = arith.constant 9.99999974E-6 : f32
    %104 = vector.broadcast %cst_29 : f32 to vector<4x1xf32>
    %105 = arith.addf %103, %104 : vector<4x1xf32>
    %106 = math.rsqrt %105 : vector<4x1xf32>
    %107 = arith.mulf %1, %106 : vector<4x1xf32>
    %108 = vector.broadcast %107 : vector<4x1xf32> to vector<4x256xf32>
    %109 = arith.mulf %98, %108 : vector<4x256xf32>
    %110 = vector.broadcast %2 : vector<4x1xf32> to vector<4x256xf32>
    %111 = arith.addf %109, %110 : vector<4x256xf32>
    %cst_30 = arith.constant 0.000000e+00 : f32
    %112 = vector.broadcast %cst_30 : f32 to vector<4x256xf32>
    %113 = arith.maximumf %111, %112 : vector<4x256xf32>
    %114 = arith.truncf %113 : vector<4x256xf32> to vector<4x256xbf16>
    %cst_31 = arith.constant dense<0.000000e+00> : vector<4x64xf32>
    %115 = tpu.matmul %114, %4, %cst_31 {dimension_numbers = #tpu.dot_dimension_numbers<[1], [0], [0], [1], [0, 0, 1, 1], [], []>} : vector<4x256xbf16>, vector<256x64xbf16>, vector<4x64xf32> -> vector<4x64xf32>
    %c0_32 = arith.constant 0 : index
    %c0_33 = arith.constant 0 : index
    %c64 = arith.constant 64 : index
    %116 = vector.load %arg6[%c0_32, %c0_33, %c64] : memref<1x4x128xf32, #tpu.memory_space<vmem>>, vector<1x4x64xf32>
    %117 = vector.shape_cast %116 : vector<1x4x64xf32> to vector<4x64xf32>
    %118 = vector.shape_cast %115 : vector<4x64xf32> to vector<1x4x64xf32>
    tpu.vector_store %arg6[%c0_32, %c0_33, %c64], %118 {strides = array<i32>} : memref<1x4x128xf32, #tpu.memory_space<vmem>>, vector<1x4x64xf32>,
    return
  }
  func.func @transform_0(%arg0: i32) -> (i32, i32, i32) {
    %c0_i32 = arith.constant 0 : i32
    %c0_i32_0 = arith.constant 0 : i32
    %c0_i32_1 = arith.constant 0 : i32
    return %arg0, %c0_i32, %c0_i32_0 : i32, i32, i32
  }
  func.func @transform_1(%arg0: i32) -> (i32, i32) {
    %c0_i32 = arith.constant 0 : i32
    %c0_i32_0 = arith.constant 0 : i32
    %c0_i32_1 = arith.constant 0 : i32
    return %c0_i32, %c0_i32_0 : i32, i32
  }
  func.func @transform_2(%arg0: i32) -> (i32, i32) {
    %c0_i32 = arith.constant 0 : i32
    %c0_i32_0 = arith.constant 0 : i32
    %c0_i32_1 = arith.constant 0 : i32
    return %c0_i32, %c0_i32_0 : i32, i32
  }
  func.func @transform_3(%arg0: i32) -> (i32, i32) {
    %c0_i32 = arith.constant 0 : i32
    %c0_i32_0 = arith.constant 0 : i32
    %c0_i32_1 = arith.constant 0 : i32
    return %c0_i32, %c0_i32_0 : i32, i32
  }
  func.func @transform_4(%arg0: i32) -> (i32, i32) {
    %c0_i32 = arith.constant 0 : i32
    %c0_i32_0 = arith.constant 0 : i32
    %c0_i32_1 = arith.constant 0 : i32
    return %c0_i32, %c0_i32_0 : i32, i32
  }
  func.func @transform_5(%arg0: i32) -> (i32, i32, i32) {
    %c0_i32 = arith.constant 0 : i32
    %c0_i32_0 = arith.constant 0 : i32
    %c0_i32_1 = arith.constant 0 : i32
    return %arg0, %c0_i32, %c0_i32_0 : i32, i32, i32
  }
}

</mosaic_0001>

<bundles_post_ra>
// kernel: tpu_custom_call.1
= control target key start
LH: loop header
LB: loop body
LE: loop exit
PB: predicated region body
PF: predicated region fallthrough
CT: control target
= control target key end

     0   :  { %v70_v1 = vlaneseq  ;;  %v1339_v3 = vmov 1983009808   ;;  %s1341_s22 = smov 16   ;;  %s1342_s23 = smov 32   ;;  %s1845_s0 = inlined_call_operand.vmem [shape: bf16[2,3,290], index: 0, kind: input, shape index: {}]   ;;  %s1846_s1 = inlined_call_operand.vmem [shape: bf16[4,27], index: 1, kind: input, shape index: {}]   ;;  %s1847_s2 = inlined_call_operand.vmem [shape: f32[4,2], index: 2, kind: input, shape index: {}]   ;;  %s1848_s3 = inlined_call_operand.vmem [shape: bf16[3,256], index: 3, kind: input, shape index: {}]   ;;  %s1849_s4 = inlined_call_operand.vmem [shape: bf16[256,64], index: 4, kind: input, shape index: {}]   ;;  %s1850_s5 = inlined_call_operand.hbm [shape: f32[1,4,128], index: 5, kind: output, shape index: {}]  }
   0x1   :  { %v1195_v0 = vld.sshfl [vmem:[%s1848_s3] sm:$0x33 pattern:$0x76325410]  ;;  %v85_v4 = vunpack.c.l.s4 %v1339_v3  ;;  %v1394_v5 = vld [vmem:[%s1845_s0 + $0x6] sm:$0x3f] }
   0x2   :  { %v66_v2 = vcombine.high %v1195_v0, %v1195_v0  ;;  %v68_v6 = vpack.i.b16 %v1195_v0, %v1195_v0  ;;  %v71_v7 = vshrl.u32 %v70_v1, 7  ;;  %v744_v10 = vcombine.high %v1394_v5, %v1394_v5  ;;  %s1340_s3 = smov 2   ;;  %s1343_s24 = smov 18  }
   0x3   :  { %v86_v9 = vunpack.c.0.s8 %v85_v4  ;;  %v873_v36 = vcombine.low %v1394_v5, %v1394_v5 }
   0x4   :  { %v75_v8 = vpack.i.b16 %v66_v2, %v66_v2  ;;  %v95_v11 = vsub.s32 1, %v71_v7  ;;  %v72_v12 = vsub.s32 0, %v71_v7 }
   0x5   :  { %v1398_v13 = vsub.s32 %v86_v9, %v71_v7 }
   0x6   :  { %v96_v14 = vrot.slane %v68_v6, %v95_v11  ;;  %v100_v15 = vrot.slane %v75_v8, %v95_v11  ;;  %v73_v16 = vrot.slane %v68_v6, %v72_v12  ;;  %v80_v17 = vrot.slane %v75_v8, %v72_v12 }
   0x7   :  { %v751_v18 = vrot.slane %v1394_v5, %v1398_v13  ;;  %v758_v19 = vrot.slane %v744_v10, %v1398_v13 }
   0x8   :  { %v103_v20 = vcombine.low %v96_v14, %v100_v15  ;;  %v83_v21 = vcombine.low %v73_v16, %v80_v17 }
   0x9   :  { %v777_v24 = vshrl.u32 %v758_v19, 16  ;;  %v780_v25 = vshll.u32 %v758_v19, 16  ;;  %v761_v26 = vshrl.u32 %v751_v18, 16  ;;  %v764_v27 = vshll.u32 %v751_v18, 16 }
   0xa   :  { %v110_v22 = vrot.slane %v103_v20, %v1398_v13  ;;  %v1405_v23 = vrot.slane %v83_v21, %v1398_v13  ;;  %v759_v28 = vcombine.high %v751_v18, %v751_v18  ;;  %v882_v33 = vcombine.low %v751_v18, %v751_v18 }
   0xb   :  { %v779_v29 = vrot.slane %v777_v24, 6  ;;  %v782_v30 = vrot.slane %v780_v25, 7  ;;  %v763_v31 = vrot.slane %v761_v26, 6  ;;  %v766_v32 = vrot.slane %v764_v27, 7 }
   0xc   :  { %111 = vrot.lane.b32.xlu1 %v110_v22, %s1340_s3  ;;  %118 = vrot.lane.b32.xlu0 %v1405_v23, %s1341_s22  ;;  %v769_v34 = vshrl.u32 %v759_v28, 16  ;;  %v772_v35 = vshll.u32 %v759_v28, 16 }
  0x10   :  { %132 = vrot.lane.b32.xlu1 %v1405_v23, %s1342_s23  ;;  %125 = vrot.lane.b32.xlu0 %v110_v22, %s1343_s24 }
  0x11   :  { %10 = vsyncpa [#allocation3], 0  ;;  %s1344_s25 = smov 34   ;;  %s1345_s26 = smov 111   ;;  %v783_v37 = vor.u32 %v782_v30, %v779_v29  ;;  %v767_v38 = vor.u32 %v766_v32, %v763_v31  ;;  %v771_v39 = vrot.slane %v769_v34, 6  ;;  %v774_v40 = vrot.slane %v772_v35, 7 }
  0x12   :  { %s1346_s27 = smov 127   ;;  %v880_v41 = vrot.slane %v873_v36, %v1398_v13  ;;  %v978_v43 = vrot.slane %v769_v34, 5  ;;  %v979_v44 = vrot.slane %v772_v35, 6  ;;  %v975_v46 = vrot.slane %v761_v26, 5  ;;  %s1347_s28 = smov 95  }
  0x13   :  { %v775_v42 = vor.u32 %v774_v40, %v771_v39  ;;  %v976_v48 = vrot.slane %v764_v27, 6  ;;  %v981_v49 = vrot.slane %v777_v24, 5  ;;  %v982_v50 = vrot.slane %v780_v25, 6  ;;  %s1348_s29 = smov 126   ;;  %s1349_s30 = smov 96  }
  0x14   :  { %139 = vrot.lane.b32.xlu0 %v110_v22, %s1344_s25  ;;  %887 = vrot.lane.b32.xlu1 %v882_v33, %s1345_s26  ;;  %v881_v45 = vcombine.low %v880_v41, %v880_v41  ;;  %v980_v47 = vor.u32 %v979_v44, %v978_v43  ;;  %vm114_vm0 = vcmask 15360   ;;  %vm121_vm1 = vcmask 130048   ;;  %s1350_s6 = smov 94   ;;  %s1351_s7 = smov 112  }
  0x15   :  { %v977_v51 = vor.u32 %v976_v48, %v975_v46  ;;  %v983_v52 = vor.u32 %v982_v50, %v981_v49  ;;  %vm135_vm2 = vcmask 261120   ;;  %vm128_vm3 = vcmask 146432   ;;  %s1352_s10 = smov 110   ;;  %s1357_s16 = smov [#allocation2]  }
  0x16   :  { %vm142_vm4 = vcmask 277504   ;;  %vm1852_vm5 = vcmask 1039360   ;;  %vm442_vm6 = vcmask 1041408   ;;  %vm443_vm7 = vsmask.f32 1280  ;;  %s1187_s17 = sshll.u32 %s1357_s16, 4  ;;  %s1188_s17 = int_to_ptr.vmem [resolvable:$true] %s1187_s17 }
  0x17   :  { %vm1853_vm8 = vcmask 908288   ;;  %vm1851_vm9 = vcmask 1031168   ;;  %vm1619_vm10 = vmand %vm442_vm6, %vm443_vm7  ;;  %vm285_vm11 = vcmask 916480   ;;  %vm456_vm12 = vcmask 1044480   ;;  %s1315_s18 = scalar_lea.vmem %s1188_s17, 64  ;;  %p1320_p1 = scmp.lt.s32.totalorder %s1188_s17, %s1188_s17 }
  0x18   :  { %788 = vrot.lane.b32.xlu0 %v783_v37, %s1346_s27  ;;  %784 = vrot.lane.b32.xlu1 %v767_v38, %s1346_s27  ;;  %vm457_vm13 = vsmask.f32 4352  ;;  %vm410_vm14 = vcmask 777216   ;;  %vm447_vm15 = vcmask 1042432   ;;  %vm485_vm6 = vsmask.f32 2304  ;;  %p1316_p0 = scmp.ne.s32.totalorder %s1188_s17, %s1315_s18  ;;  %p1321_p2 = scmp.lt.s32.totalorder %s1315_s18, %s1315_s18 }
  0x19   :  { %vm461_vm7 = vcmask 1045504  }
  0x1a   :  { %p1322_p3 = por %p1321_p2, %p1320_p1 }
  0x1c   :  { %885 = vrot.lane.b32.xlu0 %v880_v41, %s1345_s26  ;;  %786 = vrot.lane.b32.xlu1 %v775_v42, %s1346_s27  ;;  %v1469_v42 = vld [vmem:[%s1845_s0] sm:$0x3f]  ;;  %p1323_p4 = pnand %p1322_p3, %p1316_p0 }
  0x20   :  { %986 = vrot.lane.b32.xlu1 %v980_v47, %s1347_s28  ;;  %883 = vrot.lane.b32.xlu0 %v881_v45, %s1345_s26  ;;  %v1476_v47 = vrot.slane %v1469_v42, %v1398_v13 }
  0x24   :  { %984 = vrot.lane.b32.xlu1 %v977_v51, %s1347_s28  ;;  %988 = vrot.lane.b32.xlu0 %v983_v52, %s1347_s28 }
  0x7e   :  { %v112_v53 = vpop.permute.xlu1 %111  ;;  %v119_v54 = vpop.permute.xlu0 %118 }
  0x7f   :  { %v113_v55 = vrot.slane %v112_v53, 6  ;;  %v120_v56 = vrot.slane %v119_v54, 6 }
  0x81   :  { %v1421_v57 = vsel %vm114_vm0, %v113_v55, %v112_v53  ;;  %v1423_v58 = vsel %vm121_vm1, %v120_v56, %v119_v54  ;;  %v1483_v54 = vcombine.high %v1476_v47, %v1476_v47  ;;  %vm1632_vm0 = vmand %vm456_vm12, %vm457_vm13  ;;  %vm392_vm1 = vcmask 785408  }
  0x82   :  { %v727_v59 = vmul.bf16 %v1394_v5, %v1421_v57  ;;  %v133_v60 = vpop.permute.xlu1 %132  ;;  %v126_v61 = vpop.permute.xlu0 %125  ;;  %v1429_v62 = vmul.bf16 %v1394_v5, %v1423_v58  ;;  %vm439_vm13 = vcmask 769024  }
  0x83   :  { %v134_v63 = vrot.slane %v133_v60, 6  ;;  %v127_v0 = vrot.slane %v126_v61, 6 }
  0x84   :  { %v795_v1 = vcombine.high %v727_v59, %v727_v59  ;;  %v830_v7 = vrot.slane %v1429_v62, %v1398_v13  ;;  %v802_v27 = vrot.slane %v727_v59, %v1398_v13  ;;  %v823_v43 = vcombine.high %v1429_v62, %v1429_v62 }
  0x85   :  { %v1431_v2 = vsel %vm135_vm2, %v134_v63, %v133_v60  ;;  %v1433_v3 = vsel %vm128_vm3, %v127_v0, %v126_v61  ;;  %v183_v63 = vshrl.u32 %v1483_v54, 16  ;;  %v186_v0 = vshll.u32 %v1483_v54, 16 }
  0x86   :  { %v140_v4 = vpop.permute.xlu0 %139  ;;  %v809_v6 = vrot.slane %v795_v1, %v1398_v13  ;;  %v730_v8 = vmul.bf16 %v1394_v5, %v1431_v2  ;;  %v729_v9 = vmul.bf16 %v1394_v5, %v1433_v3  ;;  %v840_v18 = vshrl.u32 %v830_v7, 16 }
  0x87   :  { %v141_v10 = vrot.slane %v140_v4, 6  ;;  %v843_v19 = vshll.u32 %v830_v7, 16  ;;  %v838_v35 = vcombine.high %v830_v7, %v830_v7  ;;  %v811_v37 = vrot.slane %v802_v27, 5 }
  0x88   :  { %v813_v11 = vrot.slane %v809_v6, 5  ;;  %v948_v12 = vcombine.high %v730_v8, %v730_v8  ;;  %v892_v14 = vcombine.high %v729_v9, %v729_v9  ;;  %v899_v15 = vrot.slane %v729_v9, %v1398_v13 }
  0x89   :  { %v1444_v16 = vsel %vm142_vm4, %v141_v10, %v140_v4  ;;  %v842_v24 = vrot.slane %v840_v18, 3  ;;  %v845_v25 = vrot.slane %v843_v19, 4  ;;  %v955_v36 = vrot.slane %v730_v8, %v1398_v13 }
  0x8a   :  { %818 = vrot.lane.b32.xlu1 %v813_v11, %s1348_s29  ;;  %v962_v17 = vrot.slane %v948_v12, %v1398_v13  ;;  %v906_v20 = vrot.slane %v892_v14, %v1398_v13  ;;  %v731_v21 = vmul.bf16 %v1394_v5, %v1444_v16  ;;  %v1450_v26 = vcombine.high %v899_v15, %v899_v15 }
  0x8b   :  { %v846_v31 = vor.u32 %v845_v25, %v842_v24  ;;  %v909_v34 = vshll.u32 %v899_v15, 16  ;;  %v848_v40 = vshrl.u32 %v838_v35, 16  ;;  %v851_v41 = vshll.u32 %v838_v35, 16 }
  0x8c   :  { %v966_v22 = vrot.slane %v962_v17, 7  ;;  %v1454_v28 = vrot.slane %v731_v21, %v1398_v13  ;;  %v917_v29 = vshll.u32 %v906_v20, 16  ;;  %v913_v30 = vshll.u32 %v1450_v26, 16 }
  0x8d   :  { %v911_v39 = vrot.slane %v909_v34, 1  ;;  %v964_v44 = vrot.slane %v955_v36, 7  ;;  %v810_v45 = vcombine.high %v802_v27, %v802_v27  ;;  %v920_v46 = vshrl.u32 %v899_v15, 16 }
  0x8e   :  { %971 = vrot.lane.b32.xlu1 %v966_v22, %s1349_s30  ;;  %1014 = vrot.lane.b32.xlu0 %v1454_v28, %s1350_s6  ;;  %v1460_v32 = vrot.slane %v913_v30, 1  ;;  %v919_v33 = vrot.slane %v917_v29, 1  ;;  %v850_v49 = vrot.slane %v848_v40, 3  ;;  %v853_v50 = vrot.slane %v851_v41, 4 }
  0x8f   :  { %v922_v48 = vor.u32 %v920_v46, %v911_v39  ;;  %v837_v51 = vrot.slane %v823_v43, %v1398_v13  ;;  %v812_v52 = vrot.slane %v810_v45, 5  ;;  %v963_v53 = vcombine.high %v955_v36, %v955_v36 }
  0x90   :  { %v1278_v38 = vpack.i.bf16 %v919_v33, %v1460_v32  ;;  %v995_v55 = vcombine.high %v731_v21, %v731_v21  ;;  %v854_v56 = vor.u32 %v853_v50, %v850_v49  ;;  %v926_v62 = vshrl.u32 %v906_v20, 16 }
  0x91   :  { %v965_v59 = vrot.slane %v963_v53, 7  ;;  %v856_v60 = vshrl.u32 %v837_v51, 16  ;;  %v859_v61 = vshll.u32 %v837_v51, 16  ;;  %v158_v1 = vcombine.high %v1469_v42, %v1469_v42 }
  0x92   :  { %863 = vrot.lane.b32.xlu1 %v846_v31, %s1351_s7  ;;  %814 = vrot.lane.b32.xlu0 %v811_v37, %s1348_s29  ;;  %v928_v4 = vor.u32 %v926_v62, %v919_v33  ;;  %v1009_v6 = vrot.slane %v995_v55, %v1398_v13  ;;  %v175_v9 = vshrl.u32 %v1476_v47, 16  ;;  %v185_v10 = vrot.slane %v183_v63, 6 }
  0x93   :  { %v858_v7 = vrot.slane %v856_v60, 3  ;;  %v861_v8 = vrot.slane %v859_v61, 4  ;;  %v188_v11 = vrot.slane %v186_v0, 7  ;;  %v178_v12 = vshll.u32 %v1476_v47, 16 }
  0x94   :  { %v1501_v14 = vrot.slane %v158_v1, %v1398_v13  ;;  %v117_v15 = vmul.bf16 %v1421_v57, %v1469_v42  ;;  %v1508_v17 = vmul.bf16 %v1423_v58, %v1469_v42  ;;  %v1011_v18 = vcombine.low %v1009_v6, %v1009_v6 }
  0x95   :  { %v862_v19 = vor.u32 %v861_v8, %v858_v7  ;;  %v189_v20 = vor.u32 %v188_v11, %v185_v10  ;;  %v177_v21 = vrot.slane %v175_v9, 6  ;;  %v180_v22 = vrot.slane %v178_v12, 7 }
  0x96   :  { %1279 = vrot.lane.b32.xlu1 %v1278_v38, %s1352_s10  ;;  %967 = vrot.lane.b32.xlu0 %v964_v44, %s1349_s30  ;;  %v191_v24 = vshrl.u32 %v1501_v14, 16  ;;  %v131_v57 = vmul.bf16 %v1433_v3, %v1469_v42  ;;  %v923_v58 = vshrl.u32 %v1450_v26, 16  ;;  %v194_v25 = vshll.u32 %v1501_v14, 16 }
  0x97   :  { %v210_v27 = vcombine.high %v117_v15, %v117_v15  ;;  %v246_v29 = vrot.slane %v1508_v17, %v1398_v13  ;;  %v1353_v30 = vmov 0   ;;  %v181_v3 = vor.u32 %v180_v22, %v177_v21 }
  0x98   :  { %1094 = vmatprep.mubr.bf16.mxu0 %v1353_v30  ;;  %539 = vmatprep.mubr.bf16.mxu1 %v1353_v30  ;;  %v925_v31 = vor.u32 %v923_v58, %v1460_v32  ;;  %v310_v33 = vcombine.high %v131_v57, %v131_v57  ;;  %v193_v26 = vrot.slane %v191_v24, 6  ;;  %v196_v34 = vrot.slane %v194_v25, 7 }
  0x99   :  { %1288 = vset.pattern.permute.xlu0 %v1353_v30  ;;  %v317_v35 = vrot.slane %v131_v57, %v1398_v13  ;;  %v224_v36 = vrot.slane %v210_v27, %v1398_v13  ;;  %v256_v37 = vshrl.u32 %v246_v29, 16  ;;  %v259_v32 = vshll.u32 %v246_v29, 16 }
  0x9a   :  { %935 = vrot.lane.b32.xlu1 %v922_v48, %s1352_s10  ;;  %816 = vrot.lane.b32.xlu0 %v812_v52, %s1348_s29  ;;  %v217_v38 = vrot.slane %v117_v15, %v1398_v13  ;;  %v1540_v40 = vrot.slane %v310_v33, %v1398_v13  ;;  %v197_v41 = vor.u32 %v196_v34, %v193_v26  ;;  %v395_v58 = vrot.slane %v175_v9, 5 }
  0x9b   :  { %v228_v43 = vrot.slane %v224_v36, 5  ;;  %v258_v44 = vrot.slane %v256_v37, 3  ;;  %v261_v45 = vrot.slane %v259_v32, 4  ;;  %v1543_v46 = vcombine.high %v317_v35, %v317_v35 }
  0x9c   :  { %v225_v48 = vcombine.high %v217_v38, %v217_v38  ;;  %v335_v51 = vshll.u32 %v1540_v40, 16  ;;  %v299_v53 = vcombine.low %v1476_v47, %v1476_v47  ;;  %v290_v55 = vcombine.low %v1469_v42, %v1469_v42 }
  0x9d   :  { %v262_v49 = vor.u32 %v261_v45, %v258_v44  ;;  %v331_v50 = vshll.u32 %v1543_v46, 16  ;;  %v226_v60 = vrot.slane %v217_v38, 5  ;;  %v338_v15 = vshrl.u32 %v317_v35, 16  ;;  %v888_v44 = vpop.permute.xlu1 %887 }
  0x9e   :  { %865 = vrot.lane.b32.xlu1 %v854_v56, %s1351_s7  ;;  %969 = vrot.lane.b32.xlu0 %v965_v59, %s1349_s30  ;;  %v227_v52 = vrot.slane %v225_v48, 5  ;;  %v297_v61 = vrot.slane %v290_v55, %v1398_v13  ;;  %v254_v21 = vcombine.high %v246_v29, %v246_v29  ;;  %v396_v27 = vrot.slane %v178_v12, 6 }
  0x9f   :  { %v1557_v59 = vrot.slane %v331_v50, 1  ;;  %v239_v54 = vcombine.high %v1508_v17, %v1508_v17  ;;  %v401_v29 = vrot.slane %v191_v24, 5  ;;  %v402_v9 = vrot.slane %v194_v25, 6 }
  0xa0   :  { %v298_v7 = vcombine.low %v297_v61, %v297_v61  ;;  %v145_v47 = vmul.bf16 %v1444_v16, %v1469_v42  ;;  %v344_v14 = vshrl.u32 %v1540_v40, 16  ;;  %v341_v40 = vshrl.u32 %v1543_v46, 16 }
  0xa1   :  { %v253_v33 = vrot.slane %v239_v54, %v1398_v13  ;;  %v403_v17 = vor.u32 %v402_v9, %v401_v29  ;;  %v785_v48 = vpop.permute.xlu1 %784  ;;  %vm470_vm2 = vcmask 1047552   ;;  %vm471_vm3 = vsmask.f32 7424 }
  0xa2   :  { %939 = vrot.lane.b32.xlu1 %v928_v4, %s1352_s10  ;;  %929 = vrot.lane.b32.xlu0 %v911_v39, %s1352_s10  ;;  %v1010_v39 = vcombine.low %v1454_v28, %v1454_v28  ;;  %v138_v28 = vmul.bf16 %v1431_v2, %v1469_v42  ;;  %v337_v2 = vrot.slane %v335_v51, 1  ;;  %v327_v4 = vshll.u32 %v317_v35, 16 }
  0xa3   :  { %v416_v34 = vcombine.high %v145_v47, %v145_v47  ;;  %v272_v36 = vshrl.u32 %v253_v33, 16  ;;  %v275_v24 = vshll.u32 %v253_v33, 16  ;;  %v423_v37 = vrot.slane %v145_v47, %v1398_v13 }
  0xa4   :  { %v367_v56 = vcombine.high %v138_v28, %v138_v28  ;;  %v1283_v62 = vpack.i.bf16 %v337_v2, %v1557_v59  ;;  %v374_v6 = vrot.slane %v138_v28, %v1398_v13  ;;  %v329_v10 = vrot.slane %v327_v4, 1 }
  0xa5   :  { %v346_v16 = vor.u32 %v344_v14, %v337_v2  ;;  %v430_v25 = vrot.slane %v416_v34, %v1398_v13  ;;  %v274_v32 = vrot.slane %v272_v36, 3  ;;  %v277_v38 = vrot.slane %v275_v24, 4  ;;  %v787_v28 = vpop.permute.xlu1 %786 }
  0xa6   :  { %1016 = vrot.lane.b32.xlu1 %v1011_v18, %s1350_s6  ;;  %867 = vrot.lane.b32.xlu0 %v862_v19, %s1351_s7  ;;  %v381_v1 = vrot.slane %v367_v56, %v1398_v13  ;;  %v382_v11 = vcombine.high %v374_v6, %v374_v6  ;;  %v398_v18 = vrot.slane %v183_v63, 5  ;;  %v399_v19 = vrot.slane %v186_v0, 6 }
  0xa7   :  { %v264_v63 = vshrl.u32 %v254_v21, 16  ;;  %v397_v0 = vor.u32 %v396_v27, %v395_v58  ;;  %v383_v26 = vrot.slane %v374_v6, 7  ;;  %v431_v45 = vcombine.low %v423_v37, %v423_v37 }
  0xa8   :  { %v385_v8 = vrot.slane %v381_v1, 7  ;;  %v384_v22 = vrot.slane %v382_v11, 7  ;;  %v400_v57 = vor.u32 %v399_v19, %v398_v18  ;;  %v726_v1 = vmul.bf16 %v1394_v5, %v1405_v23 }
  0xa9   :  { %v266_v12 = vrot.slane %v264_v63, 3  ;;  %v1605_v50 = vpop.permute.xlu1 %986  ;;  %vm359_vm4 = vcmask 900096  }
  0xaa   :  { %200 = vrot.lane.b32.xlu1 %v189_v20, %s1346_s27  ;;  %937 = vrot.lane.b32.xlu0 %v925_v31, %s1352_s10  ;;  %v340_v20 = vor.u32 %v338_v15, %v329_v10  ;;  %v267_v31 = vshll.u32 %v254_v21, 16  ;;  %v790_v15 = vsel %vm1852_vm5, %v785_v48, %v787_v28 }
  0xae   :  { %198 = vrot.lane.b32.xlu1 %v181_v3, %s1346_s27  ;;  %1012 = vrot.lane.b32.xlu0 %v1010_v39, %s1350_s6  ;;  %v269_v3 = vrot.slane %v267_v31, 4  ;;  %v432_v39 = vcombine.low %v430_v25, %v430_v25 }
  0xb0   :  { %v270_v35 = vor.u32 %v269_v3, %v266_v12 }
  0xb2   :  { %233 = vrot.lane.b32.xlu1 %v228_v43, %s1348_s29  ;;  %202 = vrot.lane.b32.xlu0 %v197_v41, %s1346_s27  ;;  %v278_v41 = vor.u32 %v277_v38, %v274_v32  ;;  %v343_v43 = vor.u32 %v341_v40, %v1557_v59 }
  0xb6   :  { %279 = vrot.lane.b32.xlu1 %v262_v49, %s1351_s7  ;;  %231 = vrot.lane.b32.xlu0 %v227_v52, %s1348_s29  ;;  %v789_v49 = vpop.permute.xlu0 %788  ;;  %v1607_v52 = vpop.permute.xlu1 %984 }
  0xb7   :  { %v791_v5 = vsel %vm1852_vm5, %v787_v28, %v789_v49  ;;  %vm475_vm5 = vcmask 1040384  }
  0xba   :  { %304 = vrot.lane.b32.xlu1 %v299_v53, %s1345_s26  ;;  %229 = vrot.lane.b32.xlu0 %v226_v60, %s1348_s29  ;;  %v886_v51 = vpop.permute.xlu0 %885 }
  0xbb   :  { %v890_v21 = vsel %vm1853_vm8, %v886_v51, %v888_v44 }
  0xbe   :  { %1284 = vrot.lane.b32.xlu1 %v1283_v62, %s1352_s10  ;;  %302 = vrot.lane.b32.xlu0 %v297_v61, %s1345_s26  ;;  %v884_v53 = vpop.permute.xlu0 %883 }
  0xc2   :  { %390 = vrot.lane.b32.xlu1 %v385_v8, %s1349_s30  ;;  %300 = vrot.lane.b32.xlu0 %v298_v7, %s1345_s26  ;;  %v1609_v55 = vpop.permute.xlu0 %988  ;;  %v739_v7 = vrot.slane %v726_v1, %v1398_v13 }
  0xc3   :  { %v991_v48 = vsel %vm410_vm14, %v1605_v50, %v1609_v55 }
  0xc4   :  { %v740_v11 = vcombine.high %v739_v7, %v739_v7 }
  0xc6   :  { %353 = vrot.lane.b32.xlu1 %v340_v20, %s1352_s10  ;;  %388 = vrot.lane.b32.xlu0 %v384_v22, %s1349_s30  ;;  %v1020_v22 = vsel %vm1619_vm10, %v739_v7, %v790_v15  ;;  %v1021_v58 = vsel %vm1619_vm10, %v740_v11, %v791_v5 }
  0xca   :  { %406 = vrot.lane.b32.xlu1 %v400_v57, %s1347_s28  ;;  %347 = vrot.lane.b32.xlu0 %v329_v10, %s1352_s10 }
  0xce   :  { %404 = vrot.lane.b32.xlu1 %v397_v0, %s1347_s28  ;;  %386 = vrot.lane.b32.xlu0 %v383_v26, %s1349_s30  ;;  %v889_v26 = vsel %vm1853_vm8, %v884_v53, %v886_v51  ;;  %vm1656_vm8 = vmand %vm447_vm15, %vm485_vm6 }
  0xd2   :  { %281 = vrot.lane.b32.xlu1 %v270_v35, %s1351_s7  ;;  %408 = vrot.lane.b32.xlu0 %v403_v17, %s1347_s28 }
  0xd6   :  { %357 = vrot.lane.b32.xlu1 %v346_v16, %s1352_s10  ;;  %435 = vrot.lane.b32.xlu0 %v423_v37, %s1350_s6  ;;  %v1354_v16 = vmov 65535  }
  0xd7   :  { %v501_v25 = vsel %vm456_vm12, 4294967295, %v1354_v16  ;;  %vm1854_vm12 = vcmask 220160  }
  0xd8   :  { %v1675_v51 = vsel %vm461_vm7, %v501_v25, 0 }
  0xda   :  { %437 = vrot.lane.b32.xlu1 %v432_v39, %s1350_s6  ;;  %283 = vrot.lane.b32.xlu0 %v278_v41, %s1351_s7 }
  0xde   :  { %355 = vrot.lane.b32.xlu0 %v343_v43, %s1352_s10 }
  0xe2   :  { %433 = vrot.lane.b32.xlu0 %v431_v45, %s1350_s6 }
  0xfc   :  { %v819_v46 = vpop.permute.xlu1 %818 }
 0x100   :  { %v1611_v56 = vpop.permute.xlu1 %971  ;;  %v1613_v59 = vpop.permute.xlu0 %1014 }
 0x104   :  { %v864_v2 = vpop.permute.xlu1 %863  ;;  %v815_v60 = vpop.permute.xlu0 %814 }
 0x108   :  { %v1280_v61 = vpop.permute.xlu1 %1279  ;;  %v968_v62 = vpop.permute.xlu0 %967 }
 0x109   :  { %v1282_v54 = vunpack.i.h.bf16 %v1280_v61  ;;  %v1281_v0 = vunpack.i.l.bf16 %v1280_v61 }
 0x10b   :  { %v942_v24 = vsel %vm359_vm4, %v1281_v0, %v1282_v54 }
 0x10c   :  { %v936_v4 = vpop.permute.xlu1 %935  ;;  %v817_v6 = vpop.permute.xlu0 %816 }
 0x10d   :  { %v820_v57 = vsel %vm1851_vm9, %v815_v60, %v817_v6  ;;  %v821_v27 = vsel %vm1851_vm9, %v817_v6, %v819_v46  ;;  %vm1646_vm9 = vmand %vm470_vm2, %vm471_vm3  ;;  %vm1855_vm2 = vcmask 1043456   ;;  %vm1864_vm3 = vcmask 1039360  }
 0x10e   :  { %v1024_v9 = vsel %vm447_vm15, %v1020_v22, %v820_v57  ;;  %v1028_v12 = vsel %vm447_vm15, %v1021_v58, %v821_v27  ;;  %v92_v27 = vmul.bf16 %v1405_v23, %v1469_v42  ;;  %vm1865_vm6 = vmmov %vm1864_vm3 }
 0x110   :  { %v866_v8 = vpop.permute.xlu1 %865  ;;  %v970_v10 = vpop.permute.xlu0 %969 }
 0x111   :  { %v869_v31 = vsel %vm285_vm11, %v864_v2, %v866_v8  ;;  %v973_v37 = vsel %vm392_vm1, %v968_v62, %v970_v10  ;;  %v974_v40 = vsel %vm392_vm1, %v970_v10, %v1611_v56  ;;  %v990_v2 = vsel %vm410_vm14, %v1607_v52, %v1605_v50  ;;  %v1695_v50 = vld [vmem:[%s1846_s1] sm:$0x3] }
 0x112   :  { %v1030_v3 = vsel %vm1632_vm0, %v1024_v9, %v869_v31 }
 0x113   :  { %v1034_v41 = vsel %vm461_vm7, %v1030_v3, %v889_v26 }
 0x114   :  { %v940_v19 = vpop.permute.xlu1 %939  ;;  %v930_v20 = vpop.permute.xlu0 %929 }
 0x115   :  { %v941_v17 = vsel %vm359_vm4, %v930_v20, %v1281_v0  ;;  %v153_v0 = vrot.slane %v92_v27, %v1398_v13 }
 0x116   :  { %v1040_v45 = vsel %vm1646_vm9, %v1034_v41, %v941_v17 }
 0x118   :  { %v1017_v29 = vpop.permute.xlu1 %1016  ;;  %v868_v47 = vpop.permute.xlu0 %867 }
 0x119   :  { %v870_v33 = vsel %vm285_vm11, %v866_v8, %v868_v47  ;;  %v1019_v53 = vsel %vm439_vm13, %v1613_v59, %v1017_v29 }
 0x11a   :  { %v1031_v34 = vsel %vm1632_vm0, %v1028_v12, %v870_v33  ;;  %v154_v12 = vcombine.high %v153_v0, %v153_v0 }
 0x11b   :  { %v1038_v14 = vsel %vm461_vm7, %v1031_v34, %v890_v21 }
 0x11c   :  { %v201_v36 = vpop.permute.xlu1 %200  ;;  %v938_v38 = vpop.permute.xlu0 %937  ;;  %v1041_v39 = vsel %vm1646_vm9, %v1038_v14, %v942_v24 }
 0x11d   :  { %v943_v43 = vsel %vm359_vm4, %v936_v4, %v938_v38  ;;  %v944_v44 = vsel %vm359_vm4, %v938_v38, %v940_v19  ;;  %1062 = vmatprep.subr.bf16.mxu0 %v1041_v39 }
 0x11e   :  { %v1044_v28 = vsel %vm475_vm5, %v943_v43, %v973_v37  ;;  %v1048_v49 = vsel %vm475_vm5, %v944_v44, %v974_v40  ;;  %1063 = vmatpush1.bf16.msra.mxu0 %v1040_v45 }
 0x11f   :  { %v1051_v46 = vsel %vm1656_vm8, %v1048_v49, %v991_v48  ;;  %v1050_v61 = vsel %vm1656_vm8, %v1044_v28, %v990_v2 }
 0x120   :  { %v199_v56 = vpop.permute.xlu1 %198  ;;  %v1013_v55 = vpop.permute.xlu0 %1012  ;;  %v1057_v60 = vsel %vm1855_vm2, %v1051_v46, %v1019_v53 }
 0x121   :  { %v1018_v62 = vsel %vm439_vm13, %v1013_v55, %v1613_v59  ;;  %v1060_v1 = vand.u32 %v1057_v60, %v1675_v51  ;;  %v205_v29 = vsel %vm1864_vm3, %v199_v56, %v201_v36  ;;  %vm1868_vm3 = vcmask 908288  }
 0x122   :  { %v1054_v4 = vsel %vm1855_vm2, %v1050_v61, %v1018_v62  ;;  %v445_v3 = vsel %vm1619_vm10, %v153_v0, %v205_v29 }
 0x123   :  { %1064 = vmatprep.subr.bf16.mxu0 %v1060_v1  ;;  %v1058_v7 = vand.u32 %v1054_v4, %v1675_v51 }
 0x124   :  { %v234_v6 = vpop.permute.xlu1 %233  ;;  %v203_v8 = vpop.permute.xlu0 %202 }
 0x125   :  { %1065 = vmatpush1.bf16.msra.mxu0 %v1058_v7  ;;  %v206_v33 = vsel %vm1865_vm6, %v201_v36, %v203_v8  ;;  %vm1869_vm6 = vmmov %vm1868_vm3 }
 0x126   :  { %v446_v23 = vsel %vm1619_vm10, %v154_v12, %v206_v33  ;;  %vm1870_vm10 = vcmask 1043456  }
 0x128   :  { %v280_v52 = vpop.permute.xlu1 %279  ;;  %v232_v10 = vpop.permute.xlu0 %231  ;;  %1214 = vmatmul.mubr.msk.bf16.vlgmr.msra.gmra.mrb[0].mxu0 %vm1854_vm12, %v1695_v50  ;;  %vm1866_vm12 = vcmask 1031168  }
 0x129   :  { %vm1867_vm2 = vmmov %vm1866_vm12 }
 0x12a   :  { %v237_v13 = vsel %vm1867_vm2, %v232_v10, %v234_v6  ;;  %vm1179_vm2 = vcmask 1043968  }
 0x12b   :  { %v454_v39 = vsel %vm447_vm15, %v446_v23, %v237_v13 }
 0x12c   :  { %v305_v59 = vpop.permute.xlu1 %304  ;;  %v230_v11 = vpop.permute.xlu0 %229 }
 0x12d   :  { %v236_v26 = vsel %vm1866_vm12, %v230_v11, %v232_v10 }
 0x12e   :  { %v450_v42 = vsel %vm447_vm15, %v445_v3, %v236_v26 }
 0x130   :  { %v1285_v15 = vpop.permute.xlu1 %1284  ;;  %v303_v5 = vpop.permute.xlu0 %302 }
 0x131   :  { %v1287_v14 = vunpack.i.h.bf16 %v1285_v15  ;;  %v1286_v16 = vunpack.i.l.bf16 %v1285_v15  ;;  %v308_v37 = vsel %vm1869_vm6, %v303_v5, %v305_v59 }
 0x133   :  { %v361_v43 = vsel %vm359_vm4, %v1286_v16, %v1287_v14 }
 0x134   :  { %v391_v19 = vpop.permute.xlu1 %390  ;;  %v301_v20 = vpop.permute.xlu0 %300 }
 0x135   :  { %v307_v25 = vsel %vm1868_vm3, %v301_v20, %v303_v5 }
 0x138   :  { %v354_v21 = vpop.permute.xlu1 %353  ;;  %v389_v22 = vpop.permute.xlu0 %388 }
 0x139   :  { %v394_v45 = vsel %vm392_vm1, %v389_v22, %v391_v19 }
 0x13c   :  { %v407_v57 = vpop.permute.xlu1 %406  ;;  %v348_v58 = vpop.permute.xlu0 %347 }
 0x13d   :  { %v360_v48 = vsel %vm359_vm4, %v348_v58, %v1286_v16 }
 0x140   :  { %v405_v31 = vpop.permute.xlu1 %404  ;;  %v387_v54 = vpop.permute.xlu0 %386 }
 0x141   :  { %v393_v63 = vsel %vm392_vm1, %v387_v54, %v389_v22  ;;  %v411_v60 = vsel %vm410_vm14, %v405_v31, %v407_v57 }
 0x144   :  { %v282_v9 = vpop.permute.xlu1 %281  ;;  %v409_v47 = vpop.permute.xlu0 %408 }
 0x145   :  { %v286_v17 = vsel %vm285_vm11, %v280_v52, %v282_v9  ;;  %v412_v28 = vsel %vm410_vm14, %v407_v57, %v409_v47 }
 0x146   :  { %v459_v36 = vsel %vm1632_vm0, %v450_v42, %v286_v17  ;;  %v1355_v17 = vmov 1  }
 0x147   :  { %v464_v40 = vsel %vm461_vm7, %v459_v36, %v307_v25  ;;  %1289 = vset.pattern.permute.xlu1 %v1355_v17 }
 0x148   :  { %v436_v34 = vpop.permute.xlu0 %435  ;;  %v358_v24 = vpop.permute.xlu1 %357  ;;  %v473_v55 = vsel %vm1646_vm9, %v464_v40, %v360_v48  ;;  %v1300_v40 = vld [vmem:[%s1849_s4 + $0x10] sm:$0xff]   ;;  %v1304_v48 = vld [vmem:[%s1849_s4 + $0x20] sm:$0xff]  }
 0x14c   :  { %v284_v38 = vpop.permute.xlu0 %283  ;;  %v438_v49 = vpop.permute.xlu1 %437 }
 0x14d   :  { %v287_v18 = vsel %vm285_vm11, %v282_v9, %v284_v38  ;;  %v441_v1 = vsel %vm439_vm13, %v436_v34, %v438_v49  ;;  %v1295_v38 = vld [vmem:[%s1849_s4 + $0x40] sm:$0xff]   ;;  %v1306_v49 = vld [vmem:[%s1849_s4 + $0x28] sm:$0xff]  }
 0x14e   :  { %v460_v41 = vsel %vm1632_vm0, %v454_v39, %v287_v18  ;;  %v1296_v39 = vld [vmem:[%s1849_s4] sm:$0xff]   ;;  %v1297_v18 = vld [vmem:[%s1849_s4 + $0x48] sm:$0xff]   ;;  %1237 = vmatprep.subr.bf16.mxu0 %v1295_v38 }
 0x14f   :  { %v468_v44 = vsel %vm461_vm7, %v460_v41, %v308_v37  ;;  %v1775_v37 = vld [vmem:[%s1847_s2] sm:$0xf]  ;;  %1238 = vmatpush3.bf16.msra.mxu0 %v1296_v39  ;;  %v1298_v41 = vld [vmem:[%s1849_s4 + $0x8] sm:$0xff]  }
 0x150   :  { %v356_v53 = vpop.permute.xlu0 %355  ;;  %v474_v46 = vsel %vm1646_vm9, %v468_v44, %v361_v43  ;;  %vm1871_vm9 = vmmov %vm1870_vm10  ;;  %1239 = vmatprep.subr.bf16.mxu0 %v1297_v18  ;;  %v1301_v43 = vld [vmem:[%s1849_s4 + $0x58] sm:$0xff]  }
 0x151   :  { %v362_v56 = vsel %vm359_vm4, %v354_v21, %v356_v53  ;;  %v363_v2 = vsel %vm359_vm4, %v356_v53, %v358_v24  ;;  %507 = vmatprep.subr.bf16.mxu1 %v474_v46  ;;  %vm1873_vm11 = vmmov %vm1871_vm9  ;;  %v1302_v44 = vld [vmem:[%s1849_s4 + $0x18] sm:$0xff]  }
 0x152   :  { %v478_v61 = vsel %vm475_vm5, %v362_v56, %v393_v63  ;;  %v482_v62 = vsel %vm475_vm5, %v363_v2, %v394_v45  ;;  %508 = vmatpush1.bf16.msra.mxu1 %v473_v55  ;;  %vm1872_vm5 = vcmask 220160   ;;  %vm1874_vm14 = vmmov %vm1871_vm9  ;;  %v1303_v45 = vld [vmem:[%s1849_s4 + $0x60] sm:$0xff]   ;;  %v1307_v55 = vld [vmem:[%s1849_s4 + $0x70] sm:$0xff]  }
 0x153   :  { %v488_v4 = vsel %vm1656_vm8, %v482_v62, %v412_v28  ;;  %v487_v8 = vsel %vm1656_vm8, %v478_v61, %v411_v60  ;;  %vm1875_vm8 = vmmov %vm1871_vm9  ;;  %1240 = vmatpush3.bf16.msra.mxu0 %v1298_v41  ;;  %v1305_v28 = vld [vmem:[%s1849_s4 + $0x68] sm:$0xff]   ;;  %v1308_v60 = vld [vmem:[%s1849_s4 + $0x30] sm:$0xff]  }
 0x154   :  { %v434_v6 = vpop.permute.xlu0 %433  ;;  %v495_v7 = vsel %vm1870_vm10, %v488_v4, %v441_v1  ;;  %vm1876_vm15 = vmmov %vm1875_vm8  ;;  %v1309_v61 = vld [vmem:[%s1849_s4 + $0x78] sm:$0xff]  }
 0x155   :  { %v440_v35 = vsel %vm439_vm13, %v434_v6, %v436_v34  ;;  %v505_v52 = vand.u32 %v1675_v51, %v495_v7  ;;  %vm1877_vm0 = vmmov %vm1875_vm8  ;;  %v1310_v62 = vld [vmem:[%s1849_s4 + $0x38] sm:$0xff]   ;;  %vm722_vm13 = vcmask 519168  }
 0x156   :  { %v492_v10 = vsel %vm1871_vm9, %v487_v8, %v440_v35  ;;  %vm1878_vm1 = vmmov %vm1877_vm0 }
 0x157   :  { %509 = vmatprep.subr.bf16.mxu1 %v505_v52  ;;  %v503_v59 = vand.u32 %v1675_v51, %v492_v10  ;;  %vm1879_vm4 = vmmov %vm1877_vm0 }
 0x158   :  { %vm1880_vm7 = vmmov %vm1877_vm0 }
 0x159   :  { %510 = vmatpush1.bf16.msra.mxu1 %v503_v59 }
 0x15a   :  { %1215 = vmatprep.subr.bf16.mxu1 %v1295_v38 }
 0x15c   :  { %1196 = vmatmul.mubr.msk.bf16.vlgmr.msra.gmra.mrb[0].mxu1 %vm1872_vm5, %v1695_v50 }
 0x15d   :  { %1216 = vmatpush3.bf16.msra.mxu1 %v1296_v39 }
 0x15e   :  { %1217 = vmatprep.subr.bf16.mxu1 %v1297_v18 }
 0x161   :  { %1218 = vmatpush3.bf16.msra.mxu1 %v1298_v41 }
 0x1fb   :  { %v1096_v11 = vpop.f32.mrb[0].mxu0 }
 0x1fc   :  { %v1103_v15 = vsel %vm1873_vm11, %v1096_v11, 0.0  ;;  %v1098_v5 = vpop.f32.mrb[1].mxu0 }
 0x1fd   :  { %v1104_v32 = vsel %vm1874_vm14, %v1098_v5, 0.0  ;;  %v1100_v19 = vpop.f32.mrb[2].mxu0 }
 0x1fe   :  { %v1101_v20 = vpop.f32.mrb[3].mxu0  ;;  %v1105_v21 = vadd.f32 %v1104_v32, %v1103_v15 }
 0x200   :  { %1106 = vadd.xlane.f32.xlu1 %v1105_v21 }
 0x22f   :  { %v541_v22 = vpop.f32.mrb[0].mxu1 }
 0x230   :  { %v548_v57 = vsel %vm1875_vm8, %v541_v22, 0.0  ;;  %v543_v58 = vpop.f32.mrb[1].mxu1 }
 0x231   :  { %v549_v51 = vsel %vm1876_vm15, %v543_v58, 0.0  ;;  %v545_v27 = vpop.f32.mrb[2].mxu1 }
 0x232   :  { %v550_v31 = vadd.f32 %v549_v51, %v548_v57  ;;  %v546_v54 = vpop.f32.mrb[3].mxu1 }
 0x234   :  { %551 = vadd.xlane.f32.xlu0 %v550_v31 }
 0x28d   :  { %v1107_v50 = vpop.xlane.xlu1 %1106 }
 0x28e   :  { %v1108_v0 = vmul.f32 0.00390625, %v1107_v50 }
 0x290   :  { %v1752_v29 = vsub.f32 %v1096_v11, %v1108_v0  ;;  %v1754_v9 = vsub.f32 %v1098_v5, %v1108_v0 }
 0x292   :  { %v1111_v47 = vmul.f32 %v1752_v29, %v1752_v29  ;;  %v1112_v12 = vmul.f32 %v1754_v9, %v1754_v9 }
 0x294   :  { %v1113_v3 = vsel %vm1877_vm0, %v1111_v47, 0.0  ;;  %v1114_v33 = vsel %vm1878_vm1, %v1112_v12, 0.0 }
 0x295   :  { %v1115_v26 = vadd.f32 %v1114_v33, %v1113_v3 }
 0x297   :  { %1116 = vadd.xlane.f32.xlu0 %v1115_v26 }
 0x2c1   :  { %v552_v34 = vpop.xlane.xlu0 %551 }
 0x2c2   :  { %v554_v23 = vmul.f32 0.00390625, %v552_v34 }
 0x2c4   :  { %v1762_v13 = vsub.f32 %v541_v22, %v554_v23  ;;  %v1764_v42 = vsub.f32 %v543_v58, %v554_v23 }
 0x2c6   :  { %v557_v24 = vmul.f32 %v1762_v13, %v1762_v13  ;;  %v558_v14 = vmul.f32 %v1764_v42, %v1764_v42 }
 0x2c8   :  { %v559_v16 = vsel %vm1879_vm4, %v557_v24, 0.0  ;;  %v560_v25 = vsel %vm1880_vm7, %v558_v14, 0.0 }
 0x2c9   :  { %v561_v36 = vadd.f32 %v560_v25, %v559_v16 }
 0x2cb   :  { %562 = vadd.xlane.f32.xlu1 %v561_v36 }
 0x2dc   :  { %577 = vperm.xlu1 %1289, %v1775_v37  }
 0x2e0   :  { %1290 = vset.pattern.permute.xlu1 %v1353_v30  ;;  %v1299_v30 = vld [vmem:[%s1849_s4 + $0x50] sm:$0xff]   ;;  %s1356_s4 = smov 64  }
 0x2e1   :  { %1241 = vmatprep.subr.bf16.mxu0 %v1299_v30  ;;  %1219 = vmatprep.subr.bf16.mxu1 %v1299_v30 }
 0x2e2   :  { %1242 = vmatpush3.bf16.msra.mxu0 %v1300_v40  ;;  %1220 = vmatpush3.bf16.msra.mxu1 %v1300_v40 }
 0x2e3   :  { %1243 = vmatprep.subr.bf16.mxu0 %v1301_v43  ;;  %1221 = vmatprep.subr.bf16.mxu1 %v1301_v43 }
 0x2e6   :  { %1244 = vmatpush3.bf16.msra.mxu0 %v1302_v44  ;;  %1222 = vmatpush3.bf16.msra.mxu1 %v1302_v44 }
 0x2e7   :  { %1245 = vmatprep.subr.bf16.mxu0 %v1303_v45  ;;  %1223 = vmatprep.subr.bf16.mxu1 %v1303_v45 }
 0x2ea   :  { %1246 = vmatpush3.bf16.msra.mxu0 %v1304_v48  ;;  %1224 = vmatpush3.bf16.msra.mxu1 %v1304_v48 }
 0x2eb   :  { %1247 = vmatprep.subr.bf16.mxu0 %v1305_v28  ;;  %1225 = vmatprep.subr.bf16.mxu1 %v1305_v28 }
 0x2ee   :  { %1248 = vmatpush3.bf16.msra.mxu0 %v1306_v49  ;;  %1226 = vmatpush3.bf16.msra.mxu1 %v1306_v49 }
 0x2ef   :  { %1249 = vmatprep.subr.bf16.mxu0 %v1307_v55  ;;  %1227 = vmatprep.subr.bf16.mxu1 %v1307_v55 }
 0x2f2   :  { %1250 = vmatpush3.bf16.msra.mxu0 %v1308_v60  ;;  %1228 = vmatpush3.bf16.msra.mxu1 %v1308_v60 }
 0x2f3   :  { %1251 = vmatprep.subr.bf16.mxu0 %v1309_v61  ;;  %1229 = vmatprep.subr.bf16.mxu1 %v1309_v61 }
 0x2f6   :  { %1252 = vmatpush3.bf16.msra.mxu0 %v1310_v62  ;;  %1230 = vmatpush3.bf16.msra.mxu1 %v1310_v62 }
 0x324   :  { %v1117_v53 = vpop.xlane.xlu0 %1116 }
 0x325   :  { %v1118_v46 = vmul.f32 0.00390625, %v1117_v53 }
 0x327   :  { %v1119_v63 = vadd.f32 1e-05, %v1118_v46 }
 0x329   :  { %1311 = vrsqrt.f32 %v1119_v63 }
 0x333   :  { %v1312_v56 = vpop.eup %1311 }
 0x334   :  { %v1121_v2 = vmul.f32 %v1312_v56, %v1775_v37 }
 0x336   :  { %1124 = vperm.xlu0 %1288, %v1121_v2  }
 0x358   :  { %v563_v1 = vpop.xlane.xlu1 %562 }
 0x359   :  { %v564_v4 = vmul.f32 0.00390625, %v563_v1 }
 0x35b   :  { %v565_v6 = vadd.f32 1e-05, %v564_v4 }
 0x35c   :  { %v578_v52 = vpop.permute.xlu1 %577 }
 0x35d   :  { %1313 = vrsqrt.f32 %v565_v6 }
 0x367   :  { %v1314_v7 = vpop.eup %1313 }
 0x368   :  { %v567_v8 = vmul.f32 %v1314_v7, %v1775_v37 }
 0x36a   :  { %570 = vperm.xlu1 %1290, %v567_v8  }
 0x3b5   :  { %v1125_v35 = vpop.permute.xlu0 %1124 }
 0x3b6   :  { %v1127_v10 = vmul.f32 %v1125_v35, %v1752_v29  ;;  %v1128_v59 = vmul.f32 %v1125_v35, %v1754_v9 }
 0x3b8   :  { %v1129_v11 = vadd.f32 %v1127_v10, %v578_v52  ;;  %v1130_v15 = vadd.f32 %v1128_v59, %v578_v52 }
 0x3ba   :  { %v1131_v5 = vmax.f32 %v1129_v11, 0.0  ;;  %v1132_v32 = vmax.f32 %v1130_v15, 0.0 }
 0x3bc   :  { %v1133_v19 = vpack.c.bf16 %v1131_v5, %v1131_v5  ;;  %v1134_v20 = vpack.c.bf16 %v1132_v32, %v1132_v32 }
 0x3be   :  { %1167 = vmatprep.mubr.bf16.mxu0 %v1134_v20 }
 0x3bf   :  { %1168 = vmatmul.mubr.bf16.vlgmr.msra.gmra.mrb[4].mxu0 %v1133_v19 }
 0x3e9   :  { %v571_v21 = vpop.permute.xlu1 %570 }
 0x3ea   :  { %v573_v22 = vmul.f32 %v571_v21, %v1762_v13  ;;  %v574_v57 = vmul.f32 %v571_v21, %v1764_v42 }
 0x3ec   :  { %v580_v58 = vadd.f32 %v578_v52, %v573_v22  ;;  %v581_v51 = vadd.f32 %v578_v52, %v574_v57 }
 0x3ee   :  { %v582_v27 = vmax.f32 %v580_v58, 0.0  ;;  %v583_v31 = vmax.f32 %v581_v51, 0.0 }
 0x3f0   :  { %v584_v54 = vpack.c.bf16 %v582_v27, %v582_v27  ;;  %v585_v50 = vpack.c.bf16 %v583_v31, %v583_v31 }
 0x3f2   :  { %714 = vmatprep.mubr.bf16.mxu1 %v585_v50 }
 0x3f3   :  { %715 = vmatmul.mubr.bf16.vlgmr.msra.gmra.mrb[4].mxu1 %v584_v54 }
 0x492   :  { %v1253_v0 = vpop.f32.mrb[4].mxu0 }
 0x493   :  { %v1254_v29 = vpop.f32.mrb[5].mxu0 }
 0x494   :  { %v1255_v9 = vadd.f32 %v1254_v29, %v1253_v0  ;;  %v1256_v47 = vpop.f32.mrb[6].mxu0 }
 0x495   :  { %v1257_v12 = vpop.f32.mrb[7].mxu0 }
 0x496   :  { %1176 = vrot.lane.b32.xlu1 %v1255_v9, %s1356_s4 }
 0x4c6   :  { %v1231_v3 = vpop.f32.mrb[4].mxu1 }
 0x4c7   :  { %v1232_v33 = vpop.f32.mrb[5].mxu1 }
 0x4c8   :  { %v1233_v26 = vadd.f32 %v1232_v33, %v1231_v3  ;;  %v1234_v17 = vpop.f32.mrb[6].mxu1 }
 0x4c9   :  { %v1235_v34 = vpop.f32.mrb[7].mxu1 }
 0x4ca   :  { %723 = vst.msk [vmem:[#allocation2] sm:$0xf] %vm722_vm13, %v1233_v26 }
 0x508   :  { %v1177_v23 = vpop.permute.xlu1 %1176 }
 0x509   :  { %1180 = vst.msk [vmem:[#allocation2] sm:$0xf] %vm1179_vm2, %v1177_v23 }
 0x50a   :  { %1326 = shalt.err (!%p1323_p4)
}
 0x50b   :  { %s1327_s20 = scalar_lea.hbm %s1850_s5, 64 }
 0x50c   :  { %p1328_p5 = scmp.ne.s32.totalorder %s1850_s5, %s1327_s20  ;;  %p1331_p6 = scmp.lt.u32.totalorder %s1327_s20, %s1850_s5 }
 0x50e   :  { %p1333_p7 = pnand %p1331_p6, %p1328_p5 }
 0x510   :  { %1336 = shalt.err (!%p1333_p7)
}
 0x511   :  { %1190 = dma.vmem_to_hbm [thread:$0]  %s1188_s17, 64, %s1850_s5, [#allocation3]  }
 0x512   :  { %1337 = dma.done.wait [#allocation3], 64  }
 0x513   :  { %1338 = vsyncadd [#allocation3], 4294967232 }
 0x514   :  { %1194 = vsyncpa [#allocation3], 1 }

</bundles_post_ra>
